<compile_context>
chip_gen: v5e
topology: v5e:2x2
jax: 0.10.0
libtpu: 0.0.40
codegen_flags: <defaults>
</compile_context>

<pallas_src>
import math

import jax
import jax.numpy as jnp
from jax.experimental import pallas as pl
from jax.experimental.pallas import tpu as pltpu

K = 7      # conv kernel size
PAD = 3    # conv padding


def _band_weights(w, W):
    """(1, 2, 7, 7) conv weight -> (2, 7, W, W) band matrices.

    band[c, dh, j_in, j_out] = w[0, c, dh, j_in - j_out + PAD] when that is a valid
    tap, else 0.  The conv's zero padding along the width (lane) axis is baked into
    the band structure, so the kernel never slices along the lane axis.
    """
    w0 = w.reshape(2, K, K).astype(jnp.float32)
    j_in = jnp.arange(W)[:, None]
    j_out = jnp.arange(W)[None, :]
    dw = j_in - j_out + PAD                       # (W, W)
    mask = (dw >= 0) & (dw < K)
    dw_c = jnp.clip(dw, 0, K - 1)
    return jnp.where(mask[None, None], w0[:, :, dw_c], 0.0)   # (2, K, W, W)


def _pick_channel_tile(C, cap):
    """Largest divisor of C that is <= cap (keeps blocks exact, no remainder)."""
    ct = max(1, min(C, cap))
    while C % ct != 0:
        ct -= 1
    return ct


def _make_kernel(C, H, W):
    def kernel(b_ref, wband_ref, x_ref, o_ref, sum_sc, max_sc):
        # grid = (N, num_channel_tiles); channel axis is the (trailing) reduction axis.
        ci = pl.program_id(1)
        nct = pl.num_programs(1)

        # --- init running channel-pool accumulators -------------------------------
        @pl.when(ci == 0)
        def _():
            sum_sc[...] = jnp.zeros_like(sum_sc)
            max_sc[...] = jnp.full_like(max_sc, -jnp.inf)

        # --- pool this channel tile (unpadded (CT, H, W) block, interior only) ----
        x = x_ref[0]                                           # (CT, H, W)
        sum_sc[...] = sum_sc[...] + jnp.sum(x, axis=0)
        max_sc[...] = jnp.maximum(max_sc[...], jnp.max(x, axis=0))

        # --- last channel tile: banded-matmul 7x7 conv + SiLU ----------------------
        @pl.when(ci == nct - 1)
        def _():
            avg = sum_sc[...] * (1.0 / C)                      # (H, W)
            mx = max_sc[...]                                   # (H, W)
            zrows = jnp.zeros((PAD, W), jnp.float32)
            acc = jnp.full((H, W), b_ref[0], dtype=jnp.float32)
            for fi, f in enumerate((avg, mx)):                 # 2 pooled input channels
                # Row (dh-direction) zero padding: cheap sublane-axis concat.
                f_pad = jnp.concatenate([zrows, f, zrows], axis=0)   # (H + 2*PAD, W)
                for dh in range(K):
                    acc = acc + jnp.dot(
                        f_pad[dh:dh + H, :], wband_ref[fi, dh],
                        preferred_element_type=jnp.float32)
            out = acc * jax.nn.sigmoid(acc)                    # SiLU
            o_ref[...] = out.reshape(1, 1, H, W).astype(o_ref.dtype)

    return kernel


def spatial_attention_module(x, w, b, *, c_tile=128):
    """x: (N, C, H, W) f32; w: (1, 2, 7, 7) f32; b: (1,) f32 -> (N, 1, H, W) f32."""
    N, C, H, W = x.shape
    ct = _pick_channel_tile(C, c_tile)
    nct = C // ct

    wband = _band_weights(w, W)                   # (2, K, W, W), small, VMEM-resident
    b_flat = b.reshape(-1).astype(jnp.float32)    # (1,) scalar in SMEM
    x = x.astype(jnp.float32)

    return pl.pallas_call(
        _make_kernel(C, H, W),
        out_shape=jax.ShapeDtypeStruct((N, 1, H, W), jnp.float32),
        grid_spec=pltpu.PrefetchScalarGridSpec(
            num_scalar_prefetch=0,
            grid=(N, nct),                                              # reduction axis last
            in_specs=[
                pl.BlockSpec(memory_space=pltpu.SMEM),                  # conv bias
                pl.BlockSpec((2, K, W, W), lambda n, c: (0, 0, 0, 0)),  # banded conv weights
                pl.BlockSpec((1, ct, H, W), lambda n, c: (n, c, 0, 0)), # unpadded x channel tile
            ],
            out_specs=pl.BlockSpec((1, 1, H, W), lambda n, c: (n, 0, 0, 0)),
            scratch_shapes=[
                pltpu.VMEM((H, W), jnp.float32),   # running channel sum
                pltpu.VMEM((H, W), jnp.float32),   # running channel max
            ],
        ),
        compiler_params=pltpu.CompilerParams(
            dimension_semantics=("parallel", "arbitrary")),
    )(b_flat, wband, x)


def _reference(x, w, b):
    """Pure-JAX reference mirroring the PyTorch forward."""
    avg = jnp.mean(x, axis=1, keepdims=True)
    mx = jnp.max(x, axis=1, keepdims=True)
    pooled = jnp.concatenate([avg, mx], axis=1)                 # (N, 2, H, W)
    conv = jax.lax.conv_general_dilated(
        pooled, w, window_strides=(1, 1), padding=((PAD, PAD), (PAD, PAD)),
        dimension_numbers=("NCHW", "OIHW", "NCHW"))
    conv = conv + b.reshape(1, -1, 1, 1)
    return conv * jax.nn.sigmoid(conv)


if __name__ == "__main__":
    key = jax.random.PRNGKey(0)
    kx, kw, kb = jax.random.split(key, 3)

    N, C, H, W = 2, 4, 16, 16
    x = jax.random.normal(kx, (N, C, H, W), dtype=jnp.float32)

    # Deterministic Conv2d(2, 1, 7, padding=3) init (PyTorch-style uniform bound).
    fan_in = 2 * K * K
    bound = 1.0 / math.sqrt(fan_in)
    w = jax.random.uniform(kw, (1, 2, K, K), jnp.float32, -bound, bound)
    b = jax.random.uniform(kb, (1,), jnp.float32, -bound, bound)

    ref = _reference(x, w, b)

    # Single channel tile (C fits one block).
    out = jax.block_until_ready(spatial_attention_module(x, w, b))
    assert out.shape == (N, 1, H, W)
    assert jnp.allclose(out, ref, rtol=1e-4, atol=1e-5), "mismatch vs reference (nct=1)"

    # Exercise the tiled channel-reduction path (2 channel tiles).
    out_tiled = jax.block_until_ready(spatial_attention_module(x, w, b, c_tile=2))
    assert jnp.allclose(out_tiled, ref, rtol=1e-4, atol=1e-5), "mismatch vs reference (nct=2)"

    print("KERNEL_OK")
</pallas_src>

<mosaic_0001>
module attributes {stable_mosaic.version = 11 : i64} {
  func.func @kernel(%arg0: i32, %arg1: i32, %arg2: memref<1xf32, #tpu.memory_space<smem>>, %arg3: memref<2x7x16x16xf32, #tpu.memory_space<vmem>>, %arg4: memref<1x4x16x16xf32, #tpu.memory_space<vmem>>, %arg5: memref<1x1x16x16xf32, #tpu.memory_space<vmem>>, %arg6: memref<16x16xf32, #tpu.memory_space<vmem>>, %arg7: memref<16x16xf32, #tpu.memory_space<vmem>>) attributes {dimension_semantics = [#tpu.dimension_semantics<parallel>, #tpu.dimension_semantics<arbitrary>], iteration_bounds = array<i64: 2, 1>, scalar_prefetch = 0 : i64, scratch_operands = 2 : i64, tpu.core_type = #tpu.core_type<tc>, window_params = [{transform_indices = @transform_0, window_bounds = array<i64: 1>}, {pipeline_mode = #tpu.pipeline_mode<synchronous>, transform_indices = @transform_1, window_bounds = array<i64: 2, 7, 16, 16>}, {transform_indices = @transform_2, window_bounds = array<i64: 1, 4, 16, 16>}, {transform_indices = @transform_3, window_bounds = array<i64: 1, 1, 16, 16>}]} {
    %c0_i32 = arith.constant 0 : i32
    %0 = arith.cmpi eq, %arg1, %c0_i32 : i32
    %1 = arith.extui %0 : i1 to i32
    %c0_i32_0 = arith.constant 0 : i32
    %2 = arith.cmpi ne, %1, %c0_i32_0 : i32
    scf.if %2 {
      %cst_15 = arith.constant 0.000000e+00 : f32
      %16 = vector.broadcast %cst_15 : f32 to vector<16x16xf32>
      %c0_16 = arith.constant 0 : index
      %c0_17 = arith.constant 0 : index
      %17 = vector.load %arg6[%c0_16, %c0_17] : memref<16x16xf32, #tpu.memory_space<vmem>>, vector<16x16xf32>
      tpu.vector_store %arg6[%c0_16, %c0_17], %16 {strides = array<i32>} : memref<16x16xf32, #tpu.memory_space<vmem>>, vector<16x16xf32>,
      %cst_18 = arith.constant 0xFF800000 : f32
      %18 = vector.broadcast %cst_18 : f32 to vector<16x16xf32>
      %c0_19 = arith.constant 0 : index
      %c0_20 = arith.constant 0 : index
      %19 = vector.load %arg7[%c0_19, %c0_20] : memref<16x16xf32, #tpu.memory_space<vmem>>, vector<16x16xf32>
      tpu.vector_store %arg7[%c0_19, %c0_20], %18 {strides = array<i32>} : memref<16x16xf32, #tpu.memory_space<vmem>>, vector<16x16xf32>,
    } else {
    }
    %c0 = arith.constant 0 : index
    %c0_1 = arith.constant 0 : index
    %c0_2 = arith.constant 0 : index
    %c0_3 = arith.constant 0 : index
    %3 = vector.load %arg4[%c0, %c0_1, %c0_2, %c0_3] : memref<1x4x16x16xf32, #tpu.memory_space<vmem>>, vector<1x4x16x16xf32>
    %4 = vector.shape_cast %3 : vector<1x4x16x16xf32> to vector<4x16x16xf32>
    %c0_4 = arith.constant 0 : index
    %c0_5 = arith.constant 0 : index
    %5 = vector.load %arg6[%c0_4, %c0_5] : memref<16x16xf32, #tpu.memory_space<vmem>>, vector<16x16xf32>
    %cst = arith.constant dense<0.000000e+00> : vector<16x16xf32>
    %6 = vector.multi_reduction <add>, %4, %cst [0] : vector<4x16x16xf32> to vector<16x16xf32>
    %7 = arith.addf %5, %6 : vector<16x16xf32>
    %c0_6 = arith.constant 0 : index
    %c0_7 = arith.constant 0 : index
    %8 = vector.load %arg6[%c0_6, %c0_7] : memref<16x16xf32, #tpu.memory_space<vmem>>, vector<16x16xf32>
    tpu.vector_store %arg6[%c0_6, %c0_7], %7 {strides = array<i32>} : memref<16x16xf32, #tpu.memory_space<vmem>>, vector<16x16xf32>,
    %c0_8 = arith.constant 0 : index
    %c0_9 = arith.constant 0 : index
    %9 = vector.load %arg7[%c0_8, %c0_9] : memref<16x16xf32, #tpu.memory_space<vmem>>, vector<16x16xf32>
    %cst_10 = arith.constant dense<0xFF800000> : vector<16x16xf32>
    %10 = vector.multi_reduction <maximumf>, %4, %cst_10 [0] : vector<4x16x16xf32> to vector<16x16xf32>
    %11 = arith.maximumf %9, %10 : vector<16x16xf32>
    %c0_11 = arith.constant 0 : index
    %c0_12 = arith.constant 0 : index
    %12 = vector.load %arg7[%c0_11, %c0_12] : memref<16x16xf32, #tpu.memory_space<vmem>>, vector<16x16xf32>
    tpu.vector_store %arg7[%c0_11, %c0_12], %11 {strides = array<i32>} : memref<16x16xf32, #tpu.memory_space<vmem>>, vector<16x16xf32>,
    %c0_i32_13 = arith.constant 0 : i32
    %13 = arith.cmpi eq, %arg1, %c0_i32_13 : i32
    %14 = arith.extui %13 : i1 to i32
    %c0_i32_14 = arith.constant 0 : i32
    %15 = arith.cmpi ne, %14, %c0_i32_14 : i32
    scf.if %15 {
      %c0_15 = arith.constant 0 : index
      %c0_16 = arith.constant 0 : index
      %16 = vector.load %arg6[%c0_15, %c0_16] : memref<16x16xf32, #tpu.memory_space<vmem>>, vector<16x16xf32>
      %cst_17 = arith.constant 2.500000e-01 : f32
      %17 = vector.broadcast %cst_17 : f32 to vector<16x16xf32>
      %18 = arith.mulf %16, %17 : vector<16x16xf32>
      %c0_18 = arith.constant 0 : index
      %c0_19 = arith.constant 0 : index
      %19 = vector.load %arg7[%c0_18, %c0_19] : memref<16x16xf32, #tpu.memory_space<vmem>>, vector<16x16xf32>
      %cst_20 = arith.constant 0.000000e+00 : f32
      %20 = vector.broadcast %cst_20 : f32 to vector<3x16xf32>
      %c0_21 = arith.constant 0 : index
      %21 = memref.load %arg2[%c0_21] : memref<1xf32, #tpu.memory_space<smem>>
      %22 = vector.broadcast %21 : f32 to vector<16x16xf32>
      %23 = tpu.concatenate %20, %18, %20 in 0 : vector<3x16xf32>, vector<16x16xf32>, vector<3x16xf32> -> vector<22x16xf32>
      %24 = vector.extract_strided_slice %23 {offsets = [0, 0], sizes = [16, 16], strides = [1, 1]} : vector<22x16xf32> to vector<16x16xf32>
      %c0_22 = arith.constant 0 : index
      %c0_23 = arith.constant 0 : index
      %c0_24 = arith.constant 0 : index
      %c0_25 = arith.constant 0 : index
      %25 = vector.load %arg3[%c0_22, %c0_23, %c0_24, %c0_25] : memref<2x7x16x16xf32, #tpu.memory_space<vmem>>, vector<1x1x16x16xf32>
      %26 = vector.shape_cast %25 : vector<1x1x16x16xf32> to vector<16x16xf32>
      %cst_26 = arith.constant dense<0.000000e+00> : vector<16x16xf32>
      %27 = tpu.matmul %24, %26, %cst_26 {dimension_numbers = #tpu.dot_dimension_numbers<[1], [0], [0], [1], [0, 0, 1, 1], [], []>} : vector<16x16xf32>, vector<16x16xf32>, vector<16x16xf32> -> vector<16x16xf32>
      %28 = arith.addf %22, %27 : vector<16x16xf32>
      %29 = vector.extract_strided_slice %23 {offsets = [1, 0], sizes = [16, 16], strides = [1, 1]} : vector<22x16xf32> to vector<16x16xf32>
      %c0_27 = arith.constant 0 : index
      %c1 = arith.constant 1 : index
      %c0_28 = arith.constant 0 : index
      %c0_29 = arith.constant 0 : index
      %30 = vector.load %arg3[%c0_27, %c1, %c0_28, %c0_29] : memref<2x7x16x16xf32, #tpu.memory_space<vmem>>, vector<1x1x16x16xf32>
      %31 = vector.shape_cast %30 : vector<1x1x16x16xf32> to vector<16x16xf32>
      %cst_30 = arith.constant dense<0.000000e+00> : vector<16x16xf32>
      %32 = tpu.matmul %29, %31, %cst_30 {dimension_numbers = #tpu.dot_dimension_numbers<[1], [0], [0], [1], [0, 0, 1, 1], [], []>} : vector<16x16xf32>, vector<16x16xf32>, vector<16x16xf32> -> vector<16x16xf32>
      %33 = arith.addf %28, %32 : vector<16x16xf32>
      %34 = vector.extract_strided_slice %23 {offsets = [2, 0], sizes = [16, 16], strides = [1, 1]} : vector<22x16xf32> to vector<16x16xf32>
      %c0_31 = arith.constant 0 : index
      %c2 = arith.constant 2 : index
      %c0_32 = arith.constant 0 : index
      %c0_33 = arith.constant 0 : index
      %35 = vector.load %arg3[%c0_31, %c2, %c0_32, %c0_33] : memref<2x7x16x16xf32, #tpu.memory_space<vmem>>, vector<1x1x16x16xf32>
      %36 = vector.shape_cast %35 : vector<1x1x16x16xf32> to vector<16x16xf32>
      %cst_34 = arith.constant dense<0.000000e+00> : vector<16x16xf32>
      %37 = tpu.matmul %34, %36, %cst_34 {dimension_numbers = #tpu.dot_dimension_numbers<[1], [0], [0], [1], [0, 0, 1, 1], [], []>} : vector<16x16xf32>, vector<16x16xf32>, vector<16x16xf32> -> vector<16x16xf32>
      %38 = arith.addf %33, %37 : vector<16x16xf32>
      %39 = vector.extract_strided_slice %23 {offsets = [3, 0], sizes = [16, 16], strides = [1, 1]} : vector<22x16xf32> to vector<16x16xf32>
      %c0_35 = arith.constant 0 : index
      %c3 = arith.constant 3 : index
      %c0_36 = arith.constant 0 : index
      %c0_37 = arith.constant 0 : index
      %40 = vector.load %arg3[%c0_35, %c3, %c0_36, %c0_37] : memref<2x7x16x16xf32, #tpu.memory_space<vmem>>, vector<1x1x16x16xf32>
      %41 = vector.shape_cast %40 : vector<1x1x16x16xf32> to vector<16x16xf32>
      %cst_38 = arith.constant dense<0.000000e+00> : vector<16x16xf32>
      %42 = tpu.matmul %39, %41, %cst_38 {dimension_numbers = #tpu.dot_dimension_numbers<[1], [0], [0], [1], [0, 0, 1, 1], [], []>} : vector<16x16xf32>, vector<16x16xf32>, vector<16x16xf32> -> vector<16x16xf32>
      %43 = arith.addf %38, %42 : vector<16x16xf32>
      %44 = vector.extract_strided_slice %23 {offsets = [4, 0], sizes = [16, 16], strides = [1, 1]} : vector<22x16xf32> to vector<16x16xf32>
      %c0_39 = arith.constant 0 : index
      %c4 = arith.constant 4 : index
      %c0_40 = arith.constant 0 : index
      %c0_41 = arith.constant 0 : index
      %45 = vector.load %arg3[%c0_39, %c4, %c0_40, %c0_41] : memref<2x7x16x16xf32, #tpu.memory_space<vmem>>, vector<1x1x16x16xf32>
      %46 = vector.shape_cast %45 : vector<1x1x16x16xf32> to vector<16x16xf32>
      %cst_42 = arith.constant dense<0.000000e+00> : vector<16x16xf32>
      %47 = tpu.matmul %44, %46, %cst_42 {dimension_numbers = #tpu.dot_dimension_numbers<[1], [0], [0], [1], [0, 0, 1, 1], [], []>} : vector<16x16xf32>, vector<16x16xf32>, vector<16x16xf32> -> vector<16x16xf32>
      %48 = arith.addf %43, %47 : vector<16x16xf32>
      %49 = vector.extract_strided_slice %23 {offsets = [5, 0], sizes = [16, 16], strides = [1, 1]} : vector<22x16xf32> to vector<16x16xf32>
      %c0_43 = arith.constant 0 : index
      %c5 = arith.constant 5 : index
      %c0_44 = arith.constant 0 : index
      %c0_45 = arith.constant 0 : index
      %50 = vector.load %arg3[%c0_43, %c5, %c0_44, %c0_45] : memref<2x7x16x16xf32, #tpu.memory_space<vmem>>, vector<1x1x16x16xf32>
      %51 = vector.shape_cast %50 : vector<1x1x16x16xf32> to vector<16x16xf32>
      %cst_46 = arith.constant dense<0.000000e+00> : vector<16x16xf32>
      %52 = tpu.matmul %49, %51, %cst_46 {dimension_numbers = #tpu.dot_dimension_numbers<[1], [0], [0], [1], [0, 0, 1, 1], [], []>} : vector<16x16xf32>, vector<16x16xf32>, vector<16x16xf32> -> vector<16x16xf32>
      %53 = arith.addf %48, %52 : vector<16x16xf32>
      %54 = vector.extract_strided_slice %23 {offsets = [6, 0], sizes = [16, 16], strides = [1, 1]} : vector<22x16xf32> to vector<16x16xf32>
      %c0_47 = arith.constant 0 : index
      %c6 = arith.constant 6 : index
      %c0_48 = arith.constant 0 : index
      %c0_49 = arith.constant 0 : index
      %55 = vector.load %arg3[%c0_47, %c6, %c0_48, %c0_49] : memref<2x7x16x16xf32, #tpu.memory_space<vmem>>, vector<1x1x16x16xf32>
      %56 = vector.shape_cast %55 : vector<1x1x16x16xf32> to vector<16x16xf32>
      %cst_50 = arith.constant dense<0.000000e+00> : vector<16x16xf32>
      %57 = tpu.matmul %54, %56, %cst_50 {dimension_numbers = #tpu.dot_dimension_numbers<[1], [0], [0], [1], [0, 0, 1, 1], [], []>} : vector<16x16xf32>, vector<16x16xf32>, vector<16x16xf32> -> vector<16x16xf32>
      %58 = arith.addf %53, %57 : vector<16x16xf32>
      %59 = tpu.concatenate %20, %19, %20 in 0 : vector<3x16xf32>, vector<16x16xf32>, vector<3x16xf32> -> vector<22x16xf32>
      %60 = vector.extract_strided_slice %59 {offsets = [0, 0], sizes = [16, 16], strides = [1, 1]} : vector<22x16xf32> to vector<16x16xf32>
      %c1_51 = arith.constant 1 : index
      %c0_52 = arith.constant 0 : index
      %c0_53 = arith.constant 0 : index
      %c0_54 = arith.constant 0 : index
      %61 = vector.load %arg3[%c1_51, %c0_52, %c0_53, %c0_54] : memref<2x7x16x16xf32, #tpu.memory_space<vmem>>, vector<1x1x16x16xf32>
      %62 = vector.shape_cast %61 : vector<1x1x16x16xf32> to vector<16x16xf32>
      %cst_55 = arith.constant dense<0.000000e+00> : vector<16x16xf32>
      %63 = tpu.matmul %60, %62, %cst_55 {dimension_numbers = #tpu.dot_dimension_numbers<[1], [0], [0], [1], [0, 0, 1, 1], [], []>} : vector<16x16xf32>, vector<16x16xf32>, vector<16x16xf32> -> vector<16x16xf32>
      %64 = arith.addf %58, %63 : vector<16x16xf32>
      %65 = vector.extract_strided_slice %59 {offsets = [1, 0], sizes = [16, 16], strides = [1, 1]} : vector<22x16xf32> to vector<16x16xf32>
      %c1_56 = arith.constant 1 : index
      %c1_57 = arith.constant 1 : index
      %c0_58 = arith.constant 0 : index
      %c0_59 = arith.constant 0 : index
      %66 = vector.load %arg3[%c1_56, %c1_57, %c0_58, %c0_59] : memref<2x7x16x16xf32, #tpu.memory_space<vmem>>, vector<1x1x16x16xf32>
      %67 = vector.shape_cast %66 : vector<1x1x16x16xf32> to vector<16x16xf32>
      %cst_60 = arith.constant dense<0.000000e+00> : vector<16x16xf32>
      %68 = tpu.matmul %65, %67, %cst_60 {dimension_numbers = #tpu.dot_dimension_numbers<[1], [0], [0], [1], [0, 0, 1, 1], [], []>} : vector<16x16xf32>, vector<16x16xf32>, vector<16x16xf32> -> vector<16x16xf32>
      %69 = arith.addf %64, %68 : vector<16x16xf32>
      %70 = vector.extract_strided_slice %59 {offsets = [2, 0], sizes = [16, 16], strides = [1, 1]} : vector<22x16xf32> to vector<16x16xf32>
      %c1_61 = arith.constant 1 : index
      %c2_62 = arith.constant 2 : index
      %c0_63 = arith.constant 0 : index
      %c0_64 = arith.constant 0 : index
      %71 = vector.load %arg3[%c1_61, %c2_62, %c0_63, %c0_64] : memref<2x7x16x16xf32, #tpu.memory_space<vmem>>, vector<1x1x16x16xf32>
      %72 = vector.shape_cast %71 : vector<1x1x16x16xf32> to vector<16x16xf32>
      %cst_65 = arith.constant dense<0.000000e+00> : vector<16x16xf32>
      %73 = tpu.matmul %70, %72, %cst_65 {dimension_numbers = #tpu.dot_dimension_numbers<[1], [0], [0], [1], [0, 0, 1, 1], [], []>} : vector<16x16xf32>, vector<16x16xf32>, vector<16x16xf32> -> vector<16x16xf32>
      %74 = arith.addf %69, %73 : vector<16x16xf32>
      %75 = vector.extract_strided_slice %59 {offsets = [3, 0], sizes = [16, 16], strides = [1, 1]} : vector<22x16xf32> to vector<16x16xf32>
      %c1_66 = arith.constant 1 : index
      %c3_67 = arith.constant 3 : index
      %c0_68 = arith.constant 0 : index
      %c0_69 = arith.constant 0 : index
      %76 = vector.load %arg3[%c1_66, %c3_67, %c0_68, %c0_69] : memref<2x7x16x16xf32, #tpu.memory_space<vmem>>, vector<1x1x16x16xf32>
      %77 = vector.shape_cast %76 : vector<1x1x16x16xf32> to vector<16x16xf32>
      %cst_70 = arith.constant dense<0.000000e+00> : vector<16x16xf32>
      %78 = tpu.matmul %75, %77, %cst_70 {dimension_numbers = #tpu.dot_dimension_numbers<[1], [0], [0], [1], [0, 0, 1, 1], [], []>} : vector<16x16xf32>, vector<16x16xf32>, vector<16x16xf32> -> vector<16x16xf32>
      %79 = arith.addf %74, %78 : vector<16x16xf32>
      %80 = vector.extract_strided_slice %59 {offsets = [4, 0], sizes = [16, 16], strides = [1, 1]} : vector<22x16xf32> to vector<16x16xf32>
      %c1_71 = arith.constant 1 : index
      %c4_72 = arith.constant 4 : index
      %c0_73 = arith.constant 0 : index
      %c0_74 = arith.constant 0 : index
      %81 = vector.load %arg3[%c1_71, %c4_72, %c0_73, %c0_74] : memref<2x7x16x16xf32, #tpu.memory_space<vmem>>, vector<1x1x16x16xf32>
      %82 = vector.shape_cast %81 : vector<1x1x16x16xf32> to vector<16x16xf32>
      %cst_75 = arith.constant dense<0.000000e+00> : vector<16x16xf32>
      %83 = tpu.matmul %80, %82, %cst_75 {dimension_numbers = #tpu.dot_dimension_numbers<[1], [0], [0], [1], [0, 0, 1, 1], [], []>} : vector<16x16xf32>, vector<16x16xf32>, vector<16x16xf32> -> vector<16x16xf32>
      %84 = arith.addf %79, %83 : vector<16x16xf32>
      %85 = vector.extract_strided_slice %59 {offsets = [5, 0], sizes = [16, 16], strides = [1, 1]} : vector<22x16xf32> to vector<16x16xf32>
      %c1_76 = arith.constant 1 : index
      %c5_77 = arith.constant 5 : index
      %c0_78 = arith.constant 0 : index
      %c0_79 = arith.constant 0 : index
      %86 = vector.load %arg3[%c1_76, %c5_77, %c0_78, %c0_79] : memref<2x7x16x16xf32, #tpu.memory_space<vmem>>, vector<1x1x16x16xf32>
      %87 = vector.shape_cast %86 : vector<1x1x16x16xf32> to vector<16x16xf32>
      %cst_80 = arith.constant dense<0.000000e+00> : vector<16x16xf32>
      %88 = tpu.matmul %85, %87, %cst_80 {dimension_numbers = #tpu.dot_dimension_numbers<[1], [0], [0], [1], [0, 0, 1, 1], [], []>} : vector<16x16xf32>, vector<16x16xf32>, vector<16x16xf32> -> vector<16x16xf32>
      %89 = arith.addf %84, %88 : vector<16x16xf32>
      %90 = vector.extract_strided_slice %59 {offsets = [6, 0], sizes = [16, 16], strides = [1, 1]} : vector<22x16xf32> to vector<16x16xf32>
      %c1_81 = arith.constant 1 : index
      %c6_82 = arith.constant 6 : index
      %c0_83 = arith.constant 0 : index
      %c0_84 = arith.constant 0 : index
      %91 = vector.load %arg3[%c1_81, %c6_82, %c0_83, %c0_84] : memref<2x7x16x16xf32, #tpu.memory_space<vmem>>, vector<1x1x16x16xf32>
      %92 = vector.shape_cast %91 : vector<1x1x16x16xf32> to vector<16x16xf32>
      %cst_85 = arith.constant dense<0.000000e+00> : vector<16x16xf32>
      %93 = tpu.matmul %90, %92, %cst_85 {dimension_numbers = #tpu.dot_dimension_numbers<[1], [0], [0], [1], [0, 0, 1, 1], [], []>} : vector<16x16xf32>, vector<16x16xf32>, vector<16x16xf32> -> vector<16x16xf32>
      %94 = arith.addf %89, %93 : vector<16x16xf32>
      %95 = arith.negf %94 : vector<16x16xf32>
      %96 = math.exp %95 : vector<16x16xf32>
      %cst_86 = arith.constant 1.000000e+00 : f32
      %97 = vector.broadcast %cst_86 : f32 to vector<16x16xf32>
      %98 = arith.addf %97, %96 : vector<16x16xf32>
      %99 = arith.divf %97, %98 : vector<16x16xf32>
      %100 = arith.mulf %94, %99 : vector<16x16xf32>
      %101 = vector.shape_cast %100 : vector<16x16xf32> to vector<1x1x16x16xf32>
      %c0_87 = arith.constant 0 : index
      %c0_88 = arith.constant 0 : index
      %c0_89 = arith.constant 0 : index
      %c0_90 = arith.constant 0 : index
      %102 = vector.load %arg5[%c0_87, %c0_88, %c0_89, %c0_90] : memref<1x1x16x16xf32, #tpu.memory_space<vmem>>, vector<1x1x16x16xf32>
      tpu.vector_store %arg5[%c0_87, %c0_88, %c0_89, %c0_90], %101 {strides = array<i32>} : memref<1x1x16x16xf32, #tpu.memory_space<vmem>>, vector<1x1x16x16xf32>,
    } else {
    }
    return
  }
  func.func @transform_0(%arg0: i32, %arg1: i32) -> i32 {
    %c0_i32 = arith.constant 0 : i32
    %c0_i32_0 = arith.constant 0 : i32
    return %c0_i32 : i32
  }
  func.func @transform_1(%arg0: i32, %arg1: i32) -> (i32, i32, i32, i32) {
    %c0_i32 = arith.constant 0 : i32
    %c0_i32_0 = arith.constant 0 : i32
    %c0_i32_1 = arith.constant 0 : i32
    %c0_i32_2 = arith.constant 0 : i32
    %c0_i32_3 = arith.constant 0 : i32
    return %c0_i32, %c0_i32_0, %c0_i32_1, %c0_i32_2 : i32, i32, i32, i32
  }
  func.func @transform_2(%arg0: i32, %arg1: i32) -> (i32, i32, i32, i32) {
    %c0_i32 = arith.constant 0 : i32
    %c0_i32_0 = arith.constant 0 : i32
    %c0_i32_1 = arith.constant 0 : i32
    return %arg0, %arg1, %c0_i32, %c0_i32_0 : i32, i32, i32, i32
  }
  func.func @transform_3(%arg0: i32, %arg1: i32) -> (i32, i32, i32, i32) {
    %c0_i32 = arith.constant 0 : i32
    %c0_i32_0 = arith.constant 0 : i32
    %c0_i32_1 = arith.constant 0 : i32
    %c0_i32_2 = arith.constant 0 : i32
    return %arg0, %c0_i32, %c0_i32_0, %c0_i32_1 : i32, i32, i32, i32
  }
}

</mosaic_0001>

<bundles_post_ra>
// kernel: tpu_custom_call.1
= control target key start
LH: loop header
LB: loop body
LE: loop exit
PB: predicated region body
PF: predicated region fallthrough
CT: control target
= control target key end

     0   :  { %s1578_s0 = inlined_call_operand.<no memory space> [shape: f32[1], index: 0, kind: input, shape index: {}]   ;;  %s1579_s1 = inlined_call_operand.hbm [shape: f32[2,7,16,16], index: 1, kind: input, shape index: {}]   ;;  %s1580_s2 = inlined_call_operand.hbm [shape: f32[2,4,16,16], index: 2, kind: input, shape index: {}]   ;;  %s1581_s3 = inlined_call_operand.hbm [shape: f32[2,1,16,16], index: 3, kind: output, shape index: {}]  }
   0x1   :  { %8 = sst [smem:[#allocation4]] %s1578_s0 }
   0x2   :  { %9 = vsyncpa [#allocation6], 0 }
   0x3   :  { %10 = vsyncpa [#allocation9], 0 }
   0x4   :  { %12 = vsyncpa [#allocation9 + $0x1], 0 }
   0x5   :  { %13 = vsyncpa [#allocation7], 0 }
   0x6   :  { %15 = vsyncpa [#allocation7 + $0x1], 0  ;;  %s1303_s14 = smov 0   ;;  %s1305_s15 = smov 0  }
   0x7   :  { %s1307_s16 = smov 0   ;;  %s1309_s17 = smov 0  }
   0x8   :  { %s1311_s18 = smov 0   ;;  %s1313_s19 = smov 0  }
   0x9 LB: > { %s985_s0 = sadd.s32 4294967295, %s1271_s19   ;;  %s986_s20 = sadd.s32 4294967294, %s1271_s19   ;;  %s1271_s19 = sphi %s1313_s19, %s21_s19   ;;  %s1267_s18 = sphi %s1311_s18, %s1593_s18   ;;  %s1263_s17 = sphi %s1309_s17, %s1592_s17   ;;  %s1259_s16 = sphi %s1307_s16, %s1591_s16   ;;  %s1255_s15 = sphi %s1305_s15, %s1590_s15   ;;  %s1251_s14 = sphi %s1303_s14, %s1589_s14  }
   0xa   : > { %p97_p0 = scmp.ne.s32.totalorder %s1255_s15, %s1251_s14  ;;  %p1337_p1 = scmp.eq.s32.totalorder %s985_s0, 0 }
   0xb   : > { %p1341_p2 = scmp.eq.s32.totalorder %s985_s0, 1  ;;  %p127_p3 = scmp.eq.s32.totalorder %s986_s20, 1 }
   0xc   : > { %p1347_p4 = por %p1337_p1, %p97_p0  ;;  %p987_p5 = scmp.ge.s32.totalorder %s1271_s19, 1 }
   0xd   : > { %p1352_p6 = por %p127_p3, %p97_p0  ;;  %p134_p7 = scmp.lt.s32.totalorder %s1271_s19, 3 }
   0xe   : > { %s148_s27 = sshll.u32 %s1579_s1, 4  ;;  %s1273_s29 = smov [#allocation5]   ;;  %s149_s27 = int_to_ptr.hbm [resolvable:$true] %s148_s27 }
   0xf   : > { %p1360_p8 = pnand %p987_p5, %p134_p7  ;;  %s150_s30 = sshll.u32 %s1273_s29, 4  ;;  %s151_s30 = int_to_ptr.vmem [resolvable:$true] %s150_s30 }
  0x10   : > { %p989_p11 = scmp.ge.s32.totalorder %s1271_s19, 2  ;;  %s1274_s4 = smov 128  }
  0x11   : > { %p1046_p9 = pneg %p1360_p8  ;;  %s1275_s5 = smov 8  }
  0x12   : > { %s33_s6 = sadd.s32 1, %s1267_s18  ;;  %s84_s7 = sadd.s32 1, %s1259_s16 }
  0x13   : > { %p1047_p10 = pnand %p1046_p9, %p1337_p1  ;;  %p35_p12 = scmp.ge.s32.totalorder %s33_s6, 2 }
  0x14   : > { %p91_p13 = scmp.ne.s32.totalorder %s1259_s16, %s1255_s15  ;;  %p92_p0 = scmp.eq.s32.totalorder %s1271_s19, 0 }
  0x15   : > { %1049 = dma.hbm_to_vmem [thread:$0]  (!%p1047_p10), %s149_s27, 3584, %s151_s30, [#allocation6], %s1274_s4, %s1274_s4, %s1275_s5  }
  0x16   : > { %s1595_s6 = smov (%p35_p12, %s33_s6), 0  ;;  %p1379_p3 = por %p92_p0, %p91_p13 }
  0x17   : > { %p1385_p5 = por %p1341_p2, %p91_p13  ;;  %s79_s10 = ssub.s32 %s1267_s18, %s1595_s6 }
  0x18   : > { %p1059_p7 = scmp.lt.s32.totalorder %s1271_s19, 2  ;;  %p82_p9 = scmp.eq.s32.totalorder %s79_s10, 0 }
  0x19   : > { %s164_s11 = sand.u32 1, %s1259_s16   ;;  %s1032_s0 = sshll.u32 %s1267_s18, 6 }
  0x1a   : > { %s990_s12 = sshll.u32 %s164_s11, 6  ;;  %s176_s26 = scalar_lea.hbm %s1580_s2, %s1032_s0 }
  0x1b   : > { %s1394_s13 = scalar_select %p82_p9, %s1259_s16, %s84_s7  }
  0x1c   : > { %s168_s27 = scalar_lea.vmem [#allocation8], %s990_s12  ;;  %s177_s22 = sshll.u32 %s176_s26, 4  ;;  %s178_s22 = int_to_ptr.hbm [resolvable:$true] %s177_s22 }
  0x1d   : > { %s179_s29 = sshll.u32 %s168_s27, 4  ;;  %p1051_p2 = pnand %p1059_p7, %p1379_p3  ;;  %s180_s29 = int_to_ptr.vmem [resolvable:$true] %s179_s29 }
  0x1e   : > { %s165_s30 = scalar_lea.sflag [#allocation9], %s164_s11  ;;  %191 = sbr.rel (%p1360_p8) target bundleno = 288 (0x120), region = 32 }
  0x1f   : > { %1053 = dma.hbm_to_vmem [thread:$0]  (!%p1051_p2), %s178_s22, 1024, %s180_s29, %s165_s30, %s1274_s4, %s1274_s4, %s1275_s5  }
  0x23   : > { %1238 = dma.done.wait (%p1337_p1), [#allocation6], 3584  }
  0x24   : > { %1240 = vsyncadd (%p1337_p1), [#allocation6], 4294963712  ;;  %s1412_s7 = sand.u32 1, %s1255_s15  }
  0x25   : > { %s995_s8 = sshll.u32 %s1412_s7, 6  ;;  %s199_s10 = scalar_lea.sflag [#allocation9], %s1412_s7 }
  0x26   : > { %s202_s11 = scalar_lea.vmem [#allocation8], %s995_s8 }
  0x27   : > { %1242 = dma.done.wait (%p1347_p4), %s199_s10, 1024  }
  0x28   : > { %1244 = vsyncadd (%p1347_p4), %s199_s10, 4294966272  ;;  %vm231_vm0 = vcmask 130048   ;;  %v1276_v0 = vmov 0.0   ;;  %v1277_v1 = vmov -inf   ;;  %v307_v2 = vld [vmem:[#allocation5 + $0x8] sm:$0xff]  ;;  %v306_v3 = vld [vmem:[#allocation5] sm:$0xff] }
  0x29   : > { %232 = vst.msk [vmem:[#allocation2] sm:$0xff] %vm231_vm0, %v1276_v0  ;;  %v236_v4 = vld [vmem:[%s202_s11] sm:$0xff]  ;;  %1034 = vmatpush.msra.mxu2 %v307_v2  ;;  %v237_v5 = vld [vmem:[%s202_s11 + $0x8] sm:$0xff]  ;;  %v238_v6 = vld [vmem:[%s202_s11 + $0x10] sm:$0xff]  ;;  %327 = vmatpush.msra.mxu0 %v307_v2  ;;  %vm298_vm1 = vcmask 1042432   ;;  %vm342_vm2 = vcmask 1046528  }
  0x2a   : > { %233 = vst.msk [vmem:[#allocation2 + $0x8] sm:$0xff] %vm231_vm0, %v1276_v0  ;;  %v239_v7 = vld [vmem:[%s202_s11 + $0x18] sm:$0xff]  ;;  %v247_v8 = vsel %vm231_vm0, %v236_v4, 0.0  ;;  %v240_v9 = vld [vmem:[%s202_s11 + $0x20] sm:$0xff]  ;;  %v241_v10 = vld [vmem:[%s202_s11 + $0x28] sm:$0xff]  ;;  %v248_v12 = vsel %vm231_vm0, %v238_v6, 0.0 }
  0x2b   : > { %234 = vst.msk [vmem:[#allocation3] sm:$0xff] %vm231_vm0, %v1277_v1  ;;  %v242_v11 = vld [vmem:[%s202_s11 + $0x30] sm:$0xff]  ;;  %v254_v13 = vsel %vm231_vm0, %v237_v5, 0.0  ;;  %v255_v14 = vsel %vm231_vm0, %v239_v7, 0.0  ;;  %1035 = vmatpush.msra.mxu2 %v306_v3  ;;  %v243_v15 = vld [vmem:[%s202_s11 + $0x38] sm:$0xff]  ;;  %v249_v16 = vadd.f32 %v248_v12, %v247_v8  ;;  %v250_v17 = vsel %vm231_vm0, %v240_v9, 0.0  ;;  %328 = vmatpush.msra.mxu0 %v306_v3 }
  0x2c   : > { %235 = vst.msk [vmem:[#allocation3 + $0x8] sm:$0xff] %vm231_vm0, %v1277_v1  ;;  %v252_v18 = vsel %vm231_vm0, %v242_v11, 0.0  ;;  %v256_v19 = vadd.f32 %v255_v14, %v254_v13  ;;  %v257_v20 = vsel %vm231_vm0, %v241_v10, 0.0  ;;  %v259_v21 = vsel %vm231_vm0, %v243_v15, 0.0  ;;  %v340_v22 = vld [vmem:[#allocation5 + $0x18] sm:$0xff]  ;;  %v379_v23 = vld [vmem:[#allocation5 + $0x28] sm:$0xff] }
  0x2d   : > { %v339_v24 = vld [vmem:[#allocation5 + $0x10] sm:$0xff]  ;;  %v267_v25 = vsel %vm231_vm0, %v236_v4, -inf  ;;  %v251_v26 = vadd.f32 %v250_v17, %v249_v16  ;;  %1036 = vmatpush.msra.mxu3 %v340_v22  ;;  %404 = vmatpush.msrb.mxu2 %v379_v23  ;;  %v417_v28 = vld [vmem:[#allocation5 + $0x38] sm:$0xff]  ;;  %v378_v29 = vld [vmem:[#allocation5 + $0x20] sm:$0xff]  ;;  %v268_v30 = vsel %vm231_vm0, %v238_v6, -inf  ;;  %v269_v31 = vsel %vm231_vm0, %v240_v9, -inf }
  0x2e   : > { %v258_v27 = vadd.f32 %v257_v20, %v256_v19  ;;  %366 = vmatpush.msra.mxu1 %v340_v22  ;;  %v455_v34 = vld [vmem:[#allocation5 + $0x48] sm:$0xff]  ;;  %v270_v35 = vmax.f32 %v267_v25, %v269_v31  ;;  %v271_v36 = vsel %vm231_vm0, %v242_v11, -inf  ;;  %v416_v39 = vld [vmem:[#allocation5 + $0x30] sm:$0xff]  ;;  %v493_v40 = vld [vmem:[#allocation5 + $0x58] sm:$0xff]  ;;  %v274_v42 = vsel %vm231_vm0, %v237_v5, -inf  ;;  %s294_s21 = sld [smem:[#allocation4]] }
  0x2f   : > { %v253_v37 = vadd.f32 %v252_v18, %v251_v26  ;;  %1037 = vmatpush.msra.mxu3 %v339_v24  ;;  %405 = vmatpush.msrb.mxu2 %v378_v29  ;;  %v272_v41 = vmax.f32 %v268_v30, %v271_v36  ;;  %v454_v43 = vld [vmem:[#allocation5 + $0x40] sm:$0xff]  ;;  %v275_v45 = vsel %vm231_vm0, %v239_v7, -inf  ;;  %v276_v46 = vsel %vm231_vm0, %v241_v10, -inf  ;;  %v492_v50 = vld [vmem:[#allocation5 + $0x50] sm:$0xff]  ;;  %v610_v0 = vld [vmem:[#allocation5 + $0x88] sm:$0xff]  ;;  %s996_s23 = sshll.u32 %s1412_s7, 4 }
  0x30   : > { %v244_v32 = vld [vmem:[#allocation2] sm:$0xff]  ;;  %v260_v38 = vadd.f32 %v259_v21, %v258_v27  ;;  %480 = vmatpush.msrb.mxu0 %v455_v34  ;;  %v278_v47 = vsel %vm231_vm0, %v243_v15, -inf  ;;  %367 = vmatpush.msra.mxu1 %v339_v24  ;;  %v277_v52 = vmax.f32 %v274_v42, %v276_v46  ;;  %v530_v2 = vld [vmem:[#allocation5 + $0x68] sm:$0xff]  ;;  %vm456_vm3 = vcmask 1043456   ;;  %v577_v11 = vld [vmem:[#allocation5 + $0x78] sm:$0xff]  ;;  %s1033_s28 = sshll.u32 %s1263_s17, 4 }
  0x31   : > { %v245_v33 = vld [vmem:[#allocation2 + $0x8] sm:$0xff]  ;;  %442 = vmatpush.msrb.mxu3 %v417_v28  ;;  %v261_v48 = vadd.f32 %v253_v37, %v244_v32  ;;  %v273_v51 = vmax.f32 %v270_v35, %v272_v41  ;;  %v279_v53 = vmax.f32 %v275_v45, %v278_v47  ;;  %v609_v5 = vld [vmem:[#allocation5 + $0x80] sm:$0xff]  ;;  %vm380_vm4 = vcmask 1045504   ;;  %v648_v16 = vld [vmem:[#allocation5 + $0x98] sm:$0xff]  ;;  %s885_s12 = scalar_lea.hbm %s1581_s3, %s1033_s28  ;;  %s225_s0 = scalar_lea.vmem [#allocation10], %s996_s23 }
  0x32   : > { %v265_v44 = vld [vmem:[#allocation3] sm:$0xff]  ;;  %v262_v49 = vadd.f32 %v260_v38, %v245_v33  ;;  %517 = vmatpush.msrb.mxu1 %v493_v40  ;;  %481 = vmatpush.msrb.mxu0 %v454_v43  ;;  %v529_v8 = vld [vmem:[#allocation5 + $0x60] sm:$0xff]  ;;  %vm418_vm5 = vcmask 1044480   ;;  %v759_v26 = vld [vmem:[#allocation5 + $0xc8] sm:$0xff]  ;;  %vm531_vm6 = vcmask 1041408   ;;  %s886_s20 = sshll.u32 %s225_s0, 4  ;;  %s887_s20 = int_to_ptr.vmem [resolvable:$true] %s886_s20 }
  0x33   : > { %443 = vmatpush.msrb.mxu3 %v416_v39  ;;  %263 = vst.msk [vmem:[#allocation2] sm:$0xff] %vm231_vm0, %v261_v48  ;;  %v281_v54 = vmax.f32 %v265_v44, %v273_v51  ;;  %v266_v55 = vld [vmem:[#allocation3 + $0x8] sm:$0xff]  ;;  %v280_v56 = vmax.f32 %v277_v52, %v279_v53  ;;  %v576_v18 = vld [vmem:[#allocation5 + $0x70] sm:$0xff]  ;;  %v685_v27 = vld [vmem:[#allocation5 + $0xa8] sm:$0xff]  ;;  %s888_s17 = sshll.u32 %s885_s12, 4  ;;  %s874_s25 = scalar_lea.sflag [#allocation7], %s1412_s7  ;;  %s889_s17 = int_to_ptr.hbm [resolvable:$true] %s888_s17 }
  0x34   : > { %264 = vst.msk [vmem:[#allocation2 + $0x8] sm:$0xff] %vm231_vm0, %v262_v49  ;;  %518 = vmatpush.msrb.mxu1 %v492_v50  ;;  %v647_v22 = vld [vmem:[#allocation5 + $0x90] sm:$0xff]  ;;  %v684_v32 = vld [vmem:[#allocation5 + $0xa0] sm:$0xff]  ;;  %v722_v35 = vld [vmem:[#allocation5 + $0xb8] sm:$0xff]  ;;  %s1199_s26 = sshra.s32 %s889_s17, 4  ;;  %s1205_s30 = scalar_lea.hbm %s1581_s3, 32  ;;  %s1200_s26 = int_to_ptr.hbm [resolvable:$true] %s1199_s26 }
  0x35   : > { %283 = vst.msk [vmem:[#allocation3] sm:$0xff] %vm231_vm0, %v281_v54  ;;  %v282_v57 = vmax.f32 %v266_v55, %v280_v56  ;;  %v796_v37 = vld [vmem:[#allocation5 + $0xd8] sm:$0xff]  ;;  %v721_v39 = vld [vmem:[#allocation5 + $0xb0] sm:$0xff]  ;;  %v758_v40 = vld [vmem:[#allocation5 + $0xc0] sm:$0xff]  ;;  %s1201_s27 = scalar_lea.hbm %s1200_s26, 16  ;;  %p1206_p10 = scmp.lt.s32.totalorder %s1200_s26, %s1581_s3 }
  0x36   : > { %v795_v43 = vld [vmem:[#allocation5 + $0xd0] sm:$0xff]  ;;  %p1202_p1 = scmp.ne.s32.totalorder %s1200_s26, %s1201_s27  ;;  %p1207_p12 = scmp.lt.s32.totalorder %s1205_s30, %s1201_s27 }
  0x37   : > { %284 = vst.msk [vmem:[#allocation3 + $0x8] sm:$0xff] %vm231_vm0, %v282_v57 }
  0x38   : > { %p1203_p4 = pnand %p1202_p1, %p1385_p5  ;;  %p1208_p13 = por %p1207_p12, %p1206_p10 }
  0x3a   : > { %v288_v58 = vld [vmem:[#allocation2] sm:$0xff]  ;;  %p1204_p8 = pneg %p1203_p4 }
  0x3b   : > { %v289_v59 = vld [vmem:[#allocation2 + $0x8] sm:$0xff]  ;;  %v290_v60 = vmul.f32 0.25, %v288_v58 }
  0x3c   : > { %v291_v61 = vmul.f32 0.25, %v289_v59  ;;  %v292_v31 = vld [vmem:[#allocation3] sm:$0xff]  ;;  %p1209_p0 = pnand %p1208_p13, %p1204_p8 }
  0x3d   : > { %v299_v62 = vrot.slane %v290_v60, 5  ;;  %v568_v38 = vrot.slane %v292_v31, 5 }
  0x3e   : > { %v300_v63 = vrot.slane %v291_v61, 5  ;;  %v293_v28 = vld [vmem:[#allocation3 + $0x8] sm:$0xff] }
  0x3f   : > { %v1445_v1 = vsel %vm298_vm1, 0.0, %v299_v62  ;;  %v569_v36 = vrot.slane %v293_v28, 5  ;;  %v573_v47 = vsel %vm298_vm1, 0.0, %v568_v38 }
  0x40   : > { %v1448_v3 = vsel %vm298_vm1, %v299_v62, %v300_v63  ;;  %v1451_v4 = vsel %vm298_vm1, %v300_v63, 0.0  ;;  %997 = vmatmul.msk.f32.vlgmr.msra.gmra.mxu0 %vm231_vm0, %v1445_v1  ;;  %v381_v9 = vrot.slane %v1445_v1, 2  ;;  %v343_v12 = vrot.slane %v1445_v1, 1 }
  0x41   : > { %998 = vmatmul.msk.f32.vlgmr.msra.gmra.mxu2 %vm231_vm0, %v1448_v3  ;;  %v344_v6 = vrot.slane %v1448_v3, 1  ;;  %v346_v7 = vrot.slane %v1451_v4, 1  ;;  %635 = vmatpush.msra.mxu0 %v610_v0  ;;  %v382_v10 = vrot.slane %v1448_v3, 2  ;;  %v457_v13 = vrot.slane %v1445_v1, 4 }
  0x42   : > { %555 = vmatpush.msra.mxu2 %v530_v2  ;;  %v458_v15 = vrot.slane %v1448_v3, 4  ;;  %v419_v19 = vrot.slane %v1445_v1, 3  ;;  %v420_v20 = vrot.slane %v1448_v3, 3  ;;  %v494_v24 = vrot.slane %v1445_v1, 5 }
  0x43   : > { %v347_v14 = vsel %vm342_vm2, %v344_v6, %v346_v7  ;;  %636 = vmatpush.msra.mxu0 %v609_v5  ;;  %v345_v17 = vsel %vm342_vm2, %v343_v12, %v344_v6  ;;  %v383_v23 = vsel %vm380_vm4, %v381_v9, %v382_v10  ;;  %v495_v25 = vrot.slane %v1448_v3, 5 }
  0x44   : > { %1000 = vmatmul.msk.f32.vlgmr.msra.gmra.mxu3 %vm231_vm0, %v347_v14  ;;  %556 = vmatpush.msra.mxu2 %v529_v8  ;;  %v459_v21 = vsel %vm456_vm3, %v457_v13, %v458_v15  ;;  %v421_v29 = vsel %vm418_vm5, %v419_v19, %v420_v20  ;;  %v460_v30 = vrot.slane %v1451_v4, 4  ;;  %v384_v33 = vrot.slane %v1451_v4, 2 }
  0x45   : > { %597 = vmatpush.msra.mxu3 %v577_v11  ;;  %999 = vmatmul.msk.f32.vlgmr.msra.gmra.mxu1 %vm231_vm0, %v345_v17  ;;  %v496_v34 = vsel %vm298_vm1, %v494_v24, %v495_v25  ;;  %v422_v41 = vrot.slane %v1451_v4, 3  ;;  %v497_v45 = vrot.slane %v1451_v4, 5  ;;  %v1487_v46 = vsel %vm298_vm1, %v568_v38, %v569_v36 }
  0x46   : > { %672 = vmatpush.msra.mxu1 %v648_v16  ;;  %v461_v42 = vsel %vm456_vm3, %v458_v15, %v460_v30  ;;  %v385_v44 = vsel %vm380_vm4, %v382_v10, %v384_v33  ;;  %v612_v49 = vrot.slane %v573_v47, 1  ;;  %v613_v50 = vrot.slane %v1487_v46, 1 }
  0x47   : > { %598 = vmatpush.msra.mxu3 %v576_v18  ;;  %v423_v48 = vsel %vm418_vm5, %v420_v20, %v422_v41  ;;  %v532_v51 = vrot.slane %v1445_v1, 6  ;;  %v533_v52 = vrot.slane %v1448_v3, 6  ;;  %v498_v53 = vsel %vm298_vm1, %v495_v25, %v497_v45 }
  0x48   : > { %1005 = vmatmul.msk.f32.vlgmr.msrb.gmra.mxu0 %vm231_vm0, %v459_v21  ;;  %673 = vmatpush.msra.mxu1 %v647_v22  ;;  %v614_v54 = vsel %vm342_vm2, %v612_v49, %v613_v50  ;;  %v649_v56 = vrot.slane %v573_v47, 2  ;;  %v650_v57 = vrot.slane %v1487_v46, 2  ;;  %v574_v58 = vsel %vm298_vm1, %v569_v36, 0.0 }
  0x49   : > { %1001 = vmatmul.msk.f32.vlgmr.msrb.gmra.mxu2 %vm231_vm0, %v383_v23  ;;  %783 = vmatpush.msrb.mxu0 %v759_v26  ;;  %v534_v55 = vsel %vm531_vm6, %v532_v51, %v533_v52  ;;  %v615_v59 = vrot.slane %v574_v58, 1  ;;  %v535_v60 = vrot.slane %v1451_v4, 6  ;;  %v652_v0 = vrot.slane %v574_v58, 2 }
  0x4a   : > { %709 = vmatpush.msrb.mxu2 %v685_v27  ;;  %v651_v61 = vsel %vm380_vm4, %v649_v56, %v650_v57  ;;  %v760_v1 = vrot.slane %v573_v47, 5  ;;  %v761_v2 = vrot.slane %v1487_v46, 5  ;;  %v686_v3 = vrot.slane %v573_v47, 3 }
  0x4b   : > { %784 = vmatpush.msrb.mxu0 %v758_v40  ;;  %v616_v62 = vsel %vm342_vm2, %v613_v50, %v615_v59  ;;  %v536_v63 = vsel %vm531_vm6, %v533_v52, %v535_v60  ;;  %v687_v4 = vrot.slane %v1487_v46, 3  ;;  %v653_v5 = vsel %vm380_vm4, %v650_v57, %v652_v0 }
  0x4c   : > { %1003 = vmatmul.msk.f32.vlgmr.msrb.gmra.mxu3 %vm231_vm0, %v421_v29  ;;  %710 = vmatpush.msrb.mxu2 %v684_v32  ;;  %v723_v6 = vrot.slane %v573_v47, 4  ;;  %v724_v7 = vrot.slane %v1487_v46, 4  ;;  %v762_v8 = vsel %vm298_vm1, %v760_v1, %v761_v2  ;;  %v797_v10 = vrot.slane %v573_v47, 6 }
  0x4d   : > { %1007 = vmatmul.msk.f32.vlgmr.msrb.gmra.mxu1 %vm231_vm0, %v496_v34  ;;  %746 = vmatpush.msrb.mxu3 %v722_v35  ;;  %v688_v9 = vsel %vm418_vm5, %v686_v3, %v687_v4  ;;  %v798_v11 = vrot.slane %v1487_v46, 6  ;;  %v763_v13 = vrot.slane %v574_v58, 5  ;;  %v689_v14 = vrot.slane %v574_v58, 3 }
  0x4e   : > { %820 = vmatpush.msrb.mxu1 %v796_v37  ;;  %v725_v12 = vsel %vm456_vm3, %v723_v6, %v724_v7  ;;  %v726_v16 = vrot.slane %v574_v58, 4  ;;  %v800_v19 = vrot.slane %v574_v58, 6  ;;  %v295_v27 = vstv %s294_s21 }
  0x4f   : > { %747 = vmatpush.msrb.mxu3 %v721_v39  ;;  %v799_v15 = vsel %vm531_vm6, %v797_v10, %v798_v11  ;;  %v764_v17 = vsel %vm298_vm1, %v761_v2, %v763_v13  ;;  %v690_v18 = vsel %vm418_vm5, %v687_v4, %v689_v14 }
  0x50   : > { %1006 = vmatmul.msk.f32.gmra.mxu0 %vm231_vm0, %v461_v42  ;;  %821 = vmatpush.msrb.mxu1 %v795_v43  ;;  %v727_v20 = vsel %vm456_vm3, %v724_v7, %v726_v16  ;;  %v801_v21 = vsel %vm531_vm6, %v798_v11, %v800_v19 }
  0x51   : > { %1002 = vmatmul.msk.f32.gmra.mxu2 %vm231_vm0, %v385_v44 }
  0x54   : > { %1004 = vmatmul.msk.f32.gmra.mxu3 %vm231_vm0, %v423_v48 }
  0x55   : > { %1008 = vmatmul.msk.f32.gmra.mxu1 %vm231_vm0, %v498_v53 }
  0x58   : > { %1013 = vmatmul.msk.f32.vlgmr.msra.gmra.mxu0 %vm231_vm0, %v614_v54 }
  0x59   : > { %1009 = vmatmul.msk.f32.vlgmr.msra.gmra.mxu2 %vm231_vm0, %v534_v55 }
  0x5c   : > { %1011 = vmatmul.msk.f32.vlgmr.msra.gmra.mxu3 %vm231_vm0, %v573_v47 }
  0x5d   : > { %1015 = vmatmul.msk.f32.vlgmr.msra.gmra.mxu1 %vm231_vm0, %v651_v61 }
  0x60   : > { %1014 = vmatmul.msk.f32.gmra.mxu0 %vm231_vm0, %v616_v62 }
  0x61   : > { %1010 = vmatmul.msk.f32.gmra.mxu2 %vm231_vm0, %v536_v63 }
  0x64   : > { %1012 = vmatmul.msk.f32.gmra.mxu3 %vm231_vm0, %v1487_v46 }
  0x65   : > { %1016 = vmatmul.msk.f32.gmra.mxu1 %vm231_vm0, %v653_v5 }
  0x68   : > { %1021 = vmatmul.msk.f32.vlgmr.msrb.gmra.mxu0 %vm231_vm0, %v762_v8 }
  0x69   : > { %1017 = vmatmul.msk.f32.vlgmr.msrb.gmra.mxu2 %vm231_vm0, %v688_v9 }
  0x6c   : > { %1019 = vmatmul.msk.f32.vlgmr.msrb.gmra.mxu3 %vm231_vm0, %v725_v12 }
  0x6d   : > { %1023 = vmatmul.msk.f32.vlgmr.msrb.gmra.mxu1 %vm231_vm0, %v799_v15 }
  0x70   : > { %1022 = vmatmul.msk.f32.gmra.mxu0 %vm231_vm0, %v764_v17 }
  0x71   : > { %1018 = vmatmul.msk.f32.gmra.mxu2 %vm231_vm0, %v690_v18 }
  0x74   : > { %1020 = vmatmul.msk.f32.gmra.mxu3 %vm231_vm0, %v727_v20 }
  0x75   : > { %1024 = vmatmul.msk.f32.gmra.mxu1 %vm231_vm0, %v801_v21 }
  0xbd   : > { %v330_v22 = vpop.f32.mrf.mxu0 }
  0xbe   : > { %v336_v28 = vadd.f32 %v330_v22, %v295_v27 }
  0xc2   : > { %v369_v23 = vpop.f32.mrf.mxu1 }
  0xc3   : > { %v375_v31 = vadd.f32 %v369_v23, %v336_v28 }
  0xc4   : > { %v333_v24 = vpop.f32.mrf.mxu2 }
  0xc5   : > { %v483_v25 = vpop.f32.mrf.mxu0  ;;  %v337_v36 = vadd.f32 %v333_v24, %v295_v27 }
  0xc7   : > { %v372_v26 = vpop.f32.mrf.mxu3 }
  0xc8   : > { %v376_v39 = vadd.f32 %v372_v26, %v337_v36 }
  0xca   : > { %v520_v29 = vpop.f32.mrf.mxu1 }
  0xcc   : > { %v407_v30 = vpop.f32.mrf.mxu2 }
  0xcd   : > { %v486_v33 = vpop.f32.mrf.mxu0  ;;  %v413_v34 = vadd.f32 %v407_v30, %v375_v31 }
  0xcf   : > { %v445_v32 = vpop.f32.mrf.mxu3 }
  0xd0   : > { %v451_v38 = vadd.f32 %v445_v32, %v413_v34 }
  0xd2   : > { %v523_v35 = vpop.f32.mrf.mxu1  ;;  %v489_v41 = vadd.f32 %v483_v25, %v451_v38 }
  0xd4   : > { %v410_v37 = vpop.f32.mrf.mxu2  ;;  %v526_v46 = vadd.f32 %v520_v29, %v489_v41 }
  0xd5   : > { %v414_v42 = vadd.f32 %v410_v37, %v376_v39  ;;  %v638_v43 = vpop.f32.mrf.mxu0 }
  0xd7   : > { %v448_v40 = vpop.f32.mrf.mxu3 }
  0xd8   : > { %v452_v47 = vadd.f32 %v448_v40, %v414_v42 }
  0xda   : > { %v675_v44 = vpop.f32.mrf.mxu1  ;;  %v490_v50 = vadd.f32 %v486_v33, %v452_v47 }
  0xdc   : > { %v558_v45 = vpop.f32.mrf.mxu2  ;;  %v527_v54 = vadd.f32 %v523_v35, %v490_v50 }
  0xdd   : > { %v564_v48 = vadd.f32 %v558_v45, %v526_v46  ;;  %v641_v52 = vpop.f32.mrf.mxu0 }
  0xdf   : > { %v600_v49 = vpop.f32.mrf.mxu3 }
  0xe0   : > { %v606_v51 = vadd.f32 %v600_v49, %v564_v48 }
  0xe2   : > { %v678_v55 = vpop.f32.mrf.mxu1  ;;  %v644_v56 = vadd.f32 %v638_v43, %v606_v51 }
  0xe4   : > { %v561_v53 = vpop.f32.mrf.mxu2  ;;  %v681_v59 = vadd.f32 %v675_v44, %v644_v56 }
  0xe5   : > { %v565_v57 = vadd.f32 %v561_v53, %v527_v54  ;;  %v786_v63 = vpop.f32.mrf.mxu0 }
  0xe7   : > { %v603_v58 = vpop.f32.mrf.mxu3 }
  0xe8   : > { %v607_v60 = vadd.f32 %v603_v58, %v565_v57 }
  0xea   : > { %v645_v0 = vadd.f32 %v641_v52, %v607_v60  ;;  %v823_v2 = vpop.f32.mrf.mxu1 }
  0xec   : > { %v712_v61 = vpop.f32.mrf.mxu2  ;;  %v682_v5 = vadd.f32 %v678_v55, %v645_v0 }
  0xed   : > { %v718_v62 = vadd.f32 %v712_v61, %v681_v59  ;;  %v789_v11 = vpop.f32.mrf.mxu0 }
  0xef   : > { %v749_v1 = vpop.f32.mrf.mxu3 }
  0xf0   : > { %v755_v3 = vadd.f32 %v749_v1, %v718_v62 }
  0xf2   : > { %v792_v4 = vadd.f32 %v786_v63, %v755_v3  ;;  %v826_v13 = vpop.f32.mrf.mxu1 }
  0xf4   : > { %v829_v6 = vadd.f32 %v823_v2, %v792_v4  ;;  %v715_v7 = vpop.f32.mrf.mxu2 }
  0xf5   : > { %v719_v8 = vadd.f32 %v715_v7, %v682_v5 }
  0xf6   : > { %v1025_v9 = vmul.f32 -1.442695, %v829_v6 }
  0xf7   : > { %v752_v10 = vpop.f32.mrf.mxu3 }
  0xf8   : > { %1117 = vpow2.f32 %v1025_v9  ;;  %v756_v12 = vadd.f32 %v752_v10, %v719_v8 }
  0xfa   : > { %v793_v14 = vadd.f32 %v789_v11, %v756_v12 }
  0xfc   : > { %v830_v15 = vadd.f32 %v826_v13, %v793_v14 }
  0xfe   : > { %v1118_v16 = vpop.eup %1117  ;;  %v1026_v17 = vmul.f32 -1.442695, %v830_v15 }
  0xff   : > { %v837_v18 = vadd.f32 1.0, %v1118_v16 }
 0x100   : > { %1119 = vpow2.f32 %v1026_v17 }
 0x101   : > { %1121 = vrcp.f32 %v837_v18  ;;  %v850_v24 = vand.u32 2147483648, %v837_v18  ;;  %v848_v26 = vand.u32 2147483647, %v837_v18  ;;  %vm844_vm8 = vweird.f32 %v837_v18 }
 0x103   : > { %v851_v29 = vor.u32 1.1754944e-38, %v850_v24  ;;  %vm849_vm10 = vcmp.eq.f32.partialorder %v848_v26, 8.507059e+37 }
 0x106   : > { %v1120_v19 = vpop.eup %1119 }
 0x107   : > { %v1122_v20 = vpop.eup %1121  ;;  %v838_v21 = vadd.f32 1.0, %v1120_v19 }
 0x108   : > { %v840_v22 = vmul.f32 %v1122_v20, %v837_v18  ;;  %vm845_vm7 = vweird.f32 %v1122_v20 }
 0x109   : > { %1123 = vrcp.f32 %v838_v21  ;;  %vm846_vm9 = vmor %vm844_vm8, %vm845_vm7  ;;  %v865_v35 = vand.u32 2147483648, %v838_v21  ;;  %v863_v37 = vand.u32 2147483647, %v838_v21  ;;  %vm859_vm12 = vweird.f32 %v838_v21 }
 0x10a   : > { %v841_v23 = vsub.f32 1.0, %v840_v22 }
 0x10b   : > { %v866_v39 = vor.u32 1.1754944e-38, %v865_v35  ;;  %vm864_vm14 = vcmp.eq.f32.partialorder %v863_v37, 8.507059e+37 }
 0x10c   : > { %v842_v25 = vmul.f32 %v1122_v20, %v841_v23 }
 0x10e   : > { %v843_v27 = vadd.f32 %v1122_v20, %v842_v25 }
 0x10f   : > { %v1124_v28 = vpop.eup %1123 }
 0x110   : > { %v847_v30 = vsel %vm846_vm9, %v1122_v20, %v843_v27  ;;  %v855_v31 = vmul.f32 %v1124_v28, %v838_v21  ;;  %vm860_vm11 = vweird.f32 %v1124_v28 }
 0x111   : > { %v852_v32 = vsel %vm849_vm10, %v851_v29, %v847_v30  ;;  %vm861_vm13 = vmor %vm859_vm12, %vm860_vm11 }
 0x112   : > { %v869_v33 = vmul.f32 %v852_v32, %v829_v6  ;;  %v856_v34 = vsub.f32 1.0, %v855_v31 }
 0x114   : > { %871 = vst.msk [vmem:[%s225_s0] sm:$0xff] %vm231_vm0, %v869_v33  ;;  %v857_v36 = vmul.f32 %v1124_v28, %v856_v34 }
 0x116   : > { %v858_v38 = vadd.f32 %v1124_v28, %v857_v36 }
 0x118   : > { %v862_v40 = vsel %vm861_vm13, %v1124_v28, %v858_v38 }
 0x119   : > { %v867_v41 = vsel %vm864_vm14, %v866_v39, %v862_v40 }
 0x11a   : > { %v870_v42 = vmul.f32 %v867_v41, %v830_v15 }
 0x11c   : > { %872 = vst.msk [vmem:[%s225_s0 + $0x8] sm:$0xff] %vm231_vm0, %v870_v42 }
 0x11d   : > { %1212 = shalt.err (!%p1209_p0)
}
 0x11e   : > { %s1278_s7 = smov 128   ;;  %s1279_s11 = smov 8  }
 0x11f   : > { %1044 = dma.vmem_to_hbm [thread:$0]  (%p1385_p5), %s887_s20, 256, %s889_s17, %s874_s25, %s1278_s7, %s1278_s7, %s1279_s11  }
 0x120 PF: > { %s903_s21 = sand.u32 1, %s1251_s14   ;;  %p1055_p3 = pnand %p989_p11, %p1352_p6 }
 0x121   : > { %s904_s23 = scalar_lea.sflag [#allocation7], %s903_s21 }
 0x122   : > { %p1056_p7 = pneg %p1055_p3 }
 0x124   : > { %1246 = dma.done.wait (%p1056_p7), %s904_s23, 256  }
 0x125   : > { %1248 = vsyncadd (%p1056_p7), %s904_s23, 4294967040  ;;  %s21_s19 = sadd.s32 1, %s1271_s19   ;;  %s1589_s14 = smov %s1255_s15 }
 0x126   : > { %p18_p9 = scmp.ge.s32.totalorder %s21_s19, 4   ;;  %s1590_s15 = smov %s1259_s16 }
 0x127   : > { %s1591_s16 = smov %s1394_s13  ;;  %s1592_s17 = smov %s1267_s18 }
 0x128   : > { %s1593_s18 = smov %s1595_s6  ;;  %20 = sbr.rel (!%p18_p9) target bundleno = 9 (0x9), region = 103 }
 0x12d   :  { %910 = vsyncpa [#allocation6], 1 }
 0x12e   :  { %912 = vsyncpa [#allocation6 + $0x1], 1 }
 0x12f   :  { %913 = vsyncpa [#allocation9], 1 }
 0x130   :  { %915 = vsyncpa [#allocation9 + $0x1], 1 }
 0x131   :  { %916 = vsyncpa [#allocation7], 1 }
 0x132   :  { %918 = vsyncpa [#allocation7 + $0x1], 1 }

</bundles_post_ra>
